<compile_context>
chip_gen: v6e
topology: v6e:2x2x1
jax: 0.10.0
libtpu: 0.0.40
codegen_flags: <defaults>
</compile_context>

<pallas_src>
import functools
import math

import jax
import jax.numpy as jnp
from jax.experimental import pallas as pl
from jax.experimental.pallas import tpu as pltpu


def _round_up(x, m):
    return ((x + m - 1) // m) * m


# ----------------------------- in-kernel helpers -----------------------------
def _erf_approx(x):
    # Abramowitz & Stegun 7.1.26, |abs err| <= 1.5e-7.  exp + elementwise only.
    p = 0.3275911
    a1, a2, a3, a4, a5 = (0.254829592, -0.284496736, 1.421413741,
                          -1.453152027, 1.061405429)
    s = jnp.where(x >= 0, 1.0, -1.0)
    z = jnp.abs(x)
    t = 1.0 / (1.0 + p * z)
    poly = ((((a5 * t + a4) * t + a3) * t + a2) * t + a1) * t
    return s * (1.0 - poly * jnp.exp(-z * z))


def _gelu_exact(x):
    # BERT's exact gelu: x * 0.5 * (1 + erf(x / sqrt(2)))
    return 0.5 * x * (1.0 + _erf_approx(x * 0.7071067811865476))


def _transform(x, wt, bt, gamma, beta, eps):
    """BertPredictionHeadTransform: dense -> gelu -> LayerNorm (whole tile, f32)."""
    t = jnp.dot(x, wt, preferred_element_type=jnp.float32) + bt
    t = _gelu_exact(t)
    mu = jnp.mean(t, axis=-1, keepdims=True)
    var = jnp.mean(jnp.square(t - mu), axis=-1, keepdims=True)
    return (t - mu) * jax.lax.rsqrt(var + eps) * gamma + beta


# --------------------------- tok head (BertLMPredictionHead) ---------------------------
def _bert_lm_head_kernel(x_ref, wt_ref, bt_ref, g_ref, b_ref, wd_ref, bd_ref,
                         out_ref, h_scr, *, eps):
    # Transform computed once per row tile (vocab tile j == 0), kept resident in a
    # bf16 VMEM scratch and reused for every streamed vocab tile of this row tile.
    @pl.when(pl.program_id(1) == 0)
    def _():
        x = x_ref[...].astype(jnp.float32)
        h_scr[...] = _transform(x, wt_ref[...], bt_ref[...],
                                g_ref[...], b_ref[...], eps).astype(jnp.bfloat16)

    # bf16 x bf16 -> f32 accumulation on the MXU.
    out_ref[...] = (jnp.dot(h_scr[...], wd_ref[...],
                            preferred_element_type=jnp.float32)
                    + bd_ref[...]).astype(out_ref.dtype)


def bert_lm_head(x, wt, bt, gamma, beta, wd_padded, bd_padded, *, vocab,
                 vocab_tile, eps, row_tile=512, min_row_tiles=2):
    """LayerNorm(gelu(x @ wt + bt)) @ wd + bd.

    wd_padded: bf16, pre-transposed [H, V_pad] (lane = vocab), padded at init so
    V_pad is a multiple of vocab_tile.  bd_padded: f32 [1, V_pad].
    """
    batch_shape = x.shape[:-1]
    H = x.shape[-1]
    V_pad = wd_padded.shape[-1]
    tn = vocab_tile
    assert V_pad % tn == 0

    M = math.prod(batch_shape)
    xm = x.reshape(M, H)
    tm = min(row_tile, _round_up(M, 8))
    M_pad = _round_up(M, tm)
    # Guarantee >= min_row_tiles tiles on the "parallel" axis so both TensorCores
    # of a megacore part get work even for small-batch inference (costs at most
    # one extra streamed pass over wd when M < row_tile).
    if min_row_tiles > 1 and M >= 8 * min_row_tiles and M_pad // tm < min_row_tiles:
        tm = _round_up(pl.cdiv(M, min_row_tiles), 8)
        M_pad = _round_up(M, tm)
    if M_pad != M:
        xm = jnp.pad(xm, ((0, M_pad - M), (0, 0)))

    grid = (M_pad // tm, V_pad // tn)
    out = pl.pallas_call(
        functools.partial(_bert_lm_head_kernel, eps=eps),
        grid_spec=pltpu.PrefetchScalarGridSpec(
            num_scalar_prefetch=0,
            grid=grid,
            in_specs=[
                pl.BlockSpec((tm, H), lambda i, j: (i, 0)),   # hidden-state rows
                pl.BlockSpec((H, H), lambda i, j: (0, 0)),    # transform dense W
                pl.BlockSpec((1, H), lambda i, j: (0, 0)),    # transform dense b
                pl.BlockSpec((1, H), lambda i, j: (0, 0)),    # LN gamma
                pl.BlockSpec((1, H), lambda i, j: (0, 0)),    # LN beta
                pl.BlockSpec((H, tn), lambda i, j: (0, j)),   # decoder W (bf16, streamed)
                pl.BlockSpec((1, tn), lambda i, j: (0, j)),   # decoder bias
            ],
            out_specs=pl.BlockSpec((tm, tn), lambda i, j: (i, j)),
            scratch_shapes=[pltpu.VMEM((tm, H), jnp.bfloat16)],
        ),
        out_shape=jax.ShapeDtypeStruct((M_pad, V_pad), jnp.float32),
        compiler_params=pltpu.CompilerParams(
            # row tiles independent -> parallel (dual-TC on megacore parts);
            # vocab axis carries the VMEM scratch dependency -> arbitrary.
            dimension_semantics=("parallel", "arbitrary"),
            # Above the 32 MiB default scoped limit (bigger tiles on v5e/v6e),
            # below v7x's 64 MiB physical VMEM.
            vmem_limit_bytes=48 * 1024 * 1024),
    )(xm, wt, bt, gamma, beta, wd_padded, bd_padded)

    if M_pad != M or V_pad != vocab:
        out = out[:M, :vocab]
    return out.reshape(batch_shape + (vocab,))


# ------------------------ ent head (TableLMSubPredictionHead) ------------------------
def _table_sub_head_kernel(x_ref, cembT_ref, bias_ref, wt_ref, bt_ref, g_ref, b_ref,
                           out_ref, *, eps):
    # Leading batch dim of x / cembT / bias / out is pl.Squeezed(): refs are 2-D.
    h = _transform(x_ref[...].astype(jnp.float32), wt_ref[...], bt_ref[...],
                   g_ref[...], b_ref[...], eps)                       # [ts, H]
    # Plain [ts, H] x [H, N_pad] MXU dot (RHS already candidate-major, lane dense).
    scores = jnp.dot(h, cembT_ref[...].astype(jnp.float32),
                     preferred_element_type=jnp.float32)              # [ts, N_pad]
    out_ref[...] = (scores + bias_ref[...]).astype(out_ref.dtype)


def table_sub_head(x, cand_idx, cand_emb, wt, bt, gamma, beta, bias_tab, *,
                   eps, row_tile=256):
    """transform(x) @ cand_emb^T + bias[cand_idx]^T  (batched over B)."""
    B, S, H = x.shape
    _, N = cand_idx.shape

    ts = min(row_tile, _round_up(S, 8))
    S_pad = _round_up(S, ts)
    if S_pad != S:
        x = jnp.pad(x, ((0, 0), (0, S_pad - S), (0, 0)))

    # Lane = candidates: present the score-matmul RHS already as [H, N] (layout
    # plumbing outside the kernel -> no in-kernel XLU transpose) and pad the
    # candidate axis to a multiple of 128 for lane-dense unmasked stores.
    N_pad = _round_up(N, 128)
    cemb_t = jnp.swapaxes(cand_emb, 1, 2)                             # (B, H, N)
    # Wrapper-side entity-bias gather: O(B*N), replaces the in-kernel one-hot and
    # the (ent_vocab, 1) VMEM block (which cannot scale to real entity vocabs).
    # TODO(synk): indices assumed valid in [0, ent_vocab); JAX clamps OOB indices.
    bias_row = bias_tab[cand_idx.astype(jnp.int32), 0][:, None, :]    # (B, 1, N)
    if N_pad != N:
        cemb_t = jnp.pad(cemb_t, ((0, 0), (0, 0), (0, N_pad - N)))
        bias_row = jnp.pad(bias_row, ((0, 0), (0, 0), (0, N_pad - N)))

    grid = (B, S_pad // ts)
    out = pl.pallas_call(
        functools.partial(_table_sub_head_kernel, eps=eps),
        grid_spec=pltpu.PrefetchScalarGridSpec(
            num_scalar_prefetch=0,
            grid=grid,
            in_specs=[
                pl.BlockSpec((pl.Squeezed(), ts, H), lambda bi, si: (bi, si, 0)),
                pl.BlockSpec((pl.Squeezed(), H, N_pad), lambda bi, si: (bi, 0, 0)),
                pl.BlockSpec((pl.Squeezed(), 1, N_pad), lambda bi, si: (bi, 0, 0)),
                pl.BlockSpec((H, H), lambda bi, si: (0, 0)),          # transform W
                pl.BlockSpec((1, H), lambda bi, si: (0, 0)),          # transform b
                pl.BlockSpec((1, H), lambda bi, si: (0, 0)),          # LN gamma
                pl.BlockSpec((1, H), lambda bi, si: (0, 0)),          # LN beta
            ],
            out_specs=pl.BlockSpec((pl.Squeezed(), ts, N_pad),
                                   lambda bi, si: (bi, si, 0)),
        ),
        out_shape=jax.ShapeDtypeStruct((B, S_pad, N_pad), jnp.float32),
        compiler_params=pltpu.CompilerParams(
            dimension_semantics=("parallel", "parallel")),  # fully independent grid
    )(x, cemb_t, bias_row, wt, bt, gamma, beta)

    return out[:, :S, :N]


# ------------------------------------ module ------------------------------------
class TableMLMHeadPallas:
    """JAX/Pallas port of TableMLMHead (BertLMPredictionHead + TableLMSubPredictionHead).

    Synthetic deterministic parameters, stored once in kernel-ready layout:
      * dense / decoder weights pre-transposed to [in, out] (lane = out),
      * the decoder weight padded once to a multiple of the vocab tile and stored
        bf16 (MXU-native, halves the dominant HBM stream),
      * LayerNorm gamma/beta and biases stored as (1, H) / (1, V_pad) rows,
    so no per-call casts, transposes or pads of large tensors are needed.
    """

    def __init__(self, key, hidden_size, vocab_size, ent_vocab_size,
                 layer_norm_eps=1e-12, row_tile=512, vocab_tile=1024):
        H, V, VE = hidden_size, vocab_size, ent_vocab_size
        ks = jax.random.split(key, 10)
        w = lambda k, shape, s=0.05: s * jax.random.normal(k, shape, jnp.float32)

        # tok_predictions (BertLMPredictionHead): transform + decoder
        self.tok_dense_w = w(ks[0], (H, H))
        self.tok_dense_b = w(ks[1], (1, H))
        self.tok_ln_g = 1.0 + 0.1 * jax.random.normal(ks[2], (1, H), jnp.float32)
        self.tok_ln_b = w(ks[3], (1, H))

        # Decoder weight: [H, V], padded ONCE to a multiple of the vocab tile, bf16.
        tn = vocab_tile if V >= vocab_tile else _round_up(V, 128)
        V_pad = _round_up(V, tn)
        dec_w = w(ks[4], (H, V))
        dec_b = w(ks[5], (1, V), 0.02)
        if V_pad != V:
            dec_w = jnp.pad(dec_w, ((0, 0), (0, V_pad - V)))
            dec_b = jnp.pad(dec_b, ((0, 0), (0, V_pad - V)))
        self.dec_w = dec_w.astype(jnp.bfloat16)
        self.dec_b = dec_b
        self.vocab_size = V
        self.dec_vocab_tile = tn

        # ent_predictions (TableLMSubPredictionHead): transform + candidate bias
        self.ent_dense_w = w(ks[6], (H, H))
        self.ent_dense_b = w(ks[7], (1, H))
        self.ent_ln_g = 1.0 + 0.1 * jax.random.normal(ks[8], (1, H), jnp.float32)
        self.ent_ln_b = w(ks[9], (1, H))
        # nn.Embedding.from_pretrained(zeros) starts at zero; use small random
        # values so the bias-add path is actually exercised by the check.
        self.ent_bias = 0.02 * jax.random.normal(
            jax.random.fold_in(key, 123), (VE, 1), jnp.float32)

        self.eps = layer_norm_eps
        self.row_tile = row_tile

    def __call__(self, tok_sequence_output, ent_sequence_output,
                 ent_candidates, ent_candidates_embeddings):
        tok_scores = bert_lm_head(
            tok_sequence_output, self.tok_dense_w, self.tok_dense_b,
            self.tok_ln_g, self.tok_ln_b, self.dec_w, self.dec_b,
            vocab=self.vocab_size, vocab_tile=self.dec_vocab_tile,
            eps=self.eps, row_tile=self.row_tile)
        ent_scores = table_sub_head(
            ent_sequence_output, ent_candidates, ent_candidates_embeddings,
            self.ent_dense_w, self.ent_dense_b, self.ent_ln_g, self.ent_ln_b,
            self.ent_bias, eps=self.eps, row_tile=min(self.row_tile, 256))
        return tok_scores, ent_scores


# ----------------------- pure-JAX reference for verification -----------------------
def _ref_transform(x, w, b, g, beta, eps):
    hp = jax.lax.Precision.HIGHEST
    t = jax.nn.gelu(jnp.matmul(x, w, precision=hp) + b, approximate=False)
    mu = jnp.mean(t, axis=-1, keepdims=True)
    var = jnp.mean(jnp.square(t - mu), axis=-1, keepdims=True)
    return (t - mu) / jnp.sqrt(var + eps) * g + beta


def _ref_forward(m, tok_seq, ent_seq, cands, cand_emb):
    hp = jax.lax.Precision.HIGHEST
    V = m.vocab_size
    h = _ref_transform(tok_seq, m.tok_dense_w, m.tok_dense_b,
                       m.tok_ln_g, m.tok_ln_b, m.eps)
    dec_w = m.dec_w[:, :V].astype(jnp.float32)   # same (bf16-valued) weights as kernel
    tok_scores = jnp.matmul(h, dec_w, precision=hp) + m.dec_b[:, :V]
    he = _ref_transform(ent_seq, m.ent_dense_w, m.ent_dense_b,
                        m.ent_ln_g, m.ent_ln_b, m.eps)
    ent_scores = jnp.einsum('bsh,bch->bsc', he, cand_emb, precision=hp)
    ent_scores = ent_scores + m.ent_bias[cands, 0][:, None, :]
    return tok_scores, ent_scores


if __name__ == "__main__":
    # Small config consistent with the module.
    hidden_size, vocab_size, ent_vocab_size = 128, 1024, 40
    B, S_tok, S_ent, N_cand = 2, 16, 8, 10

    key = jax.random.PRNGKey(0)
    kp, k1, k2, k3, k4 = jax.random.split(key, 5)
    model = TableMLMHeadPallas(kp, hidden_size, vocab_size, ent_vocab_size)

    tok_sequence_output = jax.random.normal(k1, (B, S_tok, hidden_size), jnp.float32)
    ent_sequence_output = jax.random.normal(k2, (B, S_ent, hidden_size), jnp.float32)
    ent_candidates = jax.random.randint(k3, (B, N_cand), 0, ent_vocab_size, jnp.int32)
    ent_candidates_embeddings = 0.1 * jax.random.normal(
        k4, (B, N_cand, hidden_size), jnp.float32)

    tok_scores, ent_scores = model(tok_sequence_output, ent_sequence_output,
                                   ent_candidates, ent_candidates_embeddings)
    jax.block_until_ready((tok_scores, ent_scores))

    # Verify against the pure-JAX reference.
    rt, re = _ref_forward(model, tok_sequence_output, ent_sequence_output,
                          ent_candidates, ent_candidates_embeddings)
    assert tok_scores.shape == (B, S_tok, vocab_size)
    assert ent_scores.shape == (B, S_ent, N_cand)
    # tok head runs its decoder matmul with bf16 operands (f32 accumulation), so use
    # a bf16-appropriate tolerance against the f32 HIGHEST-precision reference.
    assert jnp.allclose(tok_scores, rt, atol=2e-2, rtol=2e-2), (
        "tok prediction scores mismatch: max abs diff %e"
        % float(jnp.max(jnp.abs(tok_scores - rt))))
    assert jnp.allclose(ent_scores, re, atol=5e-3, rtol=5e-3), (
        "ent prediction scores mismatch: max abs diff %e"
        % float(jnp.max(jnp.abs(ent_scores - re))))

    print("KERNEL_OK")
</pallas_src>

<mosaic_0001>
module attributes {stable_mosaic.version = 11 : i64} {
  func.func @_bert_lm_head_kernel(%arg0: i32, %arg1: i32, %arg2: memref<16x128xf32, #tpu.memory_space<vmem>>, %arg3: memref<128x128xf32, #tpu.memory_space<vmem>>, %arg4: memref<1x128xf32, #tpu.memory_space<vmem>>, %arg5: memref<1x128xf32, #tpu.memory_space<vmem>>, %arg6: memref<1x128xf32, #tpu.memory_space<vmem>>, %arg7: memref<128x1024xbf16, #tpu.memory_space<vmem>>, %arg8: memref<1x1024xf32, #tpu.memory_space<vmem>>, %arg9: memref<16x1024xf32, #tpu.memory_space<vmem>>, %arg10: memref<16x128xbf16, #tpu.memory_space<vmem>>) attributes {dimension_semantics = [#tpu.dimension_semantics<parallel>, #tpu.dimension_semantics<arbitrary>], iteration_bounds = array<i64: 2, 1>, scalar_prefetch = 0 : i64, scratch_operands = 1 : i64, tpu.core_type = #tpu.core_type<tc>, window_params = [{transform_indices = @transform_0, window_bounds = array<i64: 16, 128>}, {pipeline_mode = #tpu.pipeline_mode<synchronous>, transform_indices = @transform_1, window_bounds = array<i64: 128, 128>}, {pipeline_mode = #tpu.pipeline_mode<synchronous>, transform_indices = @transform_2, window_bounds = array<i64: 1, 128>}, {pipeline_mode = #tpu.pipeline_mode<synchronous>, transform_indices = @transform_3, window_bounds = array<i64: 1, 128>}, {pipeline_mode = #tpu.pipeline_mode<synchronous>, transform_indices = @transform_4, window_bounds = array<i64: 1, 128>}, {transform_indices = @transform_5, window_bounds = array<i64: 128, 1024>}, {transform_indices = @transform_6, window_bounds = array<i64: 1, 1024>}, {transform_indices = @transform_7, window_bounds = array<i64: 16, 1024>}]} {
    %c0_i32 = arith.constant 0 : i32
    %0 = arith.cmpi eq, %arg1, %c0_i32 : i32
    %1 = arith.extui %0 : i1 to i32
    %c0_i32_0 = arith.constant 0 : i32
    %2 = arith.cmpi ne, %1, %c0_i32_0 : i32
    scf.if %2 {
      %c0_8 = arith.constant 0 : index
      %c0_9 = arith.constant 0 : index
      %10 = vector.load %arg2[%c0_8, %c0_9] : memref<16x128xf32, #tpu.memory_space<vmem>>, vector<16x128xf32>
      %c0_10 = arith.constant 0 : index
      %c0_11 = arith.constant 0 : index
      %11 = vector.load %arg3[%c0_10, %c0_11] : memref<128x128xf32, #tpu.memory_space<vmem>>, vector<128x128xf32>
      %c0_12 = arith.constant 0 : index
      %c0_13 = arith.constant 0 : index
      %12 = vector.load %arg4[%c0_12, %c0_13] : memref<1x128xf32, #tpu.memory_space<vmem>>, vector<1x128xf32>
      %c0_14 = arith.constant 0 : index
      %c0_15 = arith.constant 0 : index
      %13 = vector.load %arg5[%c0_14, %c0_15] : memref<1x128xf32, #tpu.memory_space<vmem>>, vector<1x128xf32>
      %c0_16 = arith.constant 0 : index
      %c0_17 = arith.constant 0 : index
      %14 = vector.load %arg6[%c0_16, %c0_17] : memref<1x128xf32, #tpu.memory_space<vmem>>, vector<1x128xf32>
      %cst_18 = arith.constant dense<0.000000e+00> : vector<16x128xf32>
      %15 = tpu.matmul %10, %11, %cst_18 {dimension_numbers = #tpu.dot_dimension_numbers<[1], [0], [0], [1], [0, 0, 1, 1], [], []>} : vector<16x128xf32>, vector<128x128xf32>, vector<16x128xf32> -> vector<16x128xf32>
      %16 = vector.broadcast %12 : vector<1x128xf32> to vector<16x128xf32>
      %17 = arith.addf %15, %16 : vector<16x128xf32>
      %cst_19 = arith.constant 5.000000e-01 : f32
      %18 = vector.broadcast %cst_19 : f32 to vector<16x128xf32>
      %19 = arith.mulf %18, %17 : vector<16x128xf32>
      %cst_20 = arith.constant 0.707106769 : f32
      %20 = vector.broadcast %cst_20 : f32 to vector<16x128xf32>
      %21 = arith.mulf %17, %20 : vector<16x128xf32>
      %cst_21 = arith.constant 0.000000e+00 : f32
      %22 = vector.broadcast %cst_21 : f32 to vector<16x128xf32>
      %23 = arith.cmpf oge, %21, %22 : vector<16x128xf32>
      %cst_22 = arith.constant 1.000000e+00 : f32
      %cst_23 = arith.constant -1.000000e+00 : f32
      %24 = vector.broadcast %cst_22 : f32 to vector<16x128xf32>
      %25 = vector.broadcast %cst_23 : f32 to vector<16x128xf32>
      %26 = arith.select %23, %24, %25 : vector<16x128xi1>, vector<16x128xf32>
      %27 = math.absf %21 : vector<16x128xf32>
      %cst_24 = arith.constant 0.327591091 : f32
      %28 = vector.broadcast %cst_24 : f32 to vector<16x128xf32>
      %29 = arith.mulf %28, %27 : vector<16x128xf32>
      %cst_25 = arith.constant 1.000000e+00 : f32
      %30 = vector.broadcast %cst_25 : f32 to vector<16x128xf32>
      %31 = arith.addf %30, %29 : vector<16x128xf32>
      %cst_26 = arith.constant 1.000000e+00 : f32
      %32 = vector.broadcast %cst_26 : f32 to vector<16x128xf32>
      %33 = arith.divf %32, %31 : vector<16x128xf32>
      %cst_27 = arith.constant 1.06140542 : f32
      %34 = vector.broadcast %cst_27 : f32 to vector<16x128xf32>
      %35 = arith.mulf %34, %33 : vector<16x128xf32>
      %cst_28 = arith.constant -1.45315206 : f32
      %36 = vector.broadcast %cst_28 : f32 to vector<16x128xf32>
      %37 = arith.addf %35, %36 : vector<16x128xf32>
      %38 = arith.mulf %37, %33 : vector<16x128xf32>
      %cst_29 = arith.constant 1.42141378 : f32
      %39 = vector.broadcast %cst_29 : f32 to vector<16x128xf32>
      %40 = arith.addf %38, %39 : vector<16x128xf32>
      %41 = arith.mulf %40, %33 : vector<16x128xf32>
      %cst_30 = arith.constant -0.284496725 : f32
      %42 = vector.broadcast %cst_30 : f32 to vector<16x128xf32>
      %43 = arith.addf %41, %42 : vector<16x128xf32>
      %44 = arith.mulf %43, %33 : vector<16x128xf32>
      %cst_31 = arith.constant 0.254829586 : f32
      %45 = vector.broadcast %cst_31 : f32 to vector<16x128xf32>
      %46 = arith.addf %44, %45 : vector<16x128xf32>
      %47 = arith.mulf %46, %33 : vector<16x128xf32>
      %cst_32 = arith.constant 0.000000e+00 : f32
      %48 = vector.broadcast %cst_32 : f32 to vector<16x128xf32>
      %49 = arith.subf %48, %27 : vector<16x128xf32>
      %50 = arith.mulf %49, %27 : vector<16x128xf32>
      %51 = math.exp %50 : vector<16x128xf32>
      %52 = arith.mulf %47, %51 : vector<16x128xf32>
      %cst_33 = arith.constant 1.000000e+00 : f32
      %53 = vector.broadcast %cst_33 : f32 to vector<16x128xf32>
      %54 = arith.subf %53, %52 : vector<16x128xf32>
      %55 = arith.mulf %26, %54 : vector<16x128xf32>
      %cst_34 = arith.constant 1.000000e+00 : f32
      %56 = vector.broadcast %cst_34 : f32 to vector<16x128xf32>
      %57 = arith.addf %56, %55 : vector<16x128xf32>
      %58 = arith.mulf %19, %57 : vector<16x128xf32>
      %cst_35 = arith.constant dense<0.000000e+00> : vector<16xf32>
      %59 = vector.multi_reduction <add>, %58, %cst_35 [1] : vector<16x128xf32> to vector<16xf32>
      %60 = vector.shape_cast %59 : vector<16xf32> to vector<16x1xf32>
      %cst_36 = arith.constant 1.280000e+02 : f32
      %61 = vector.broadcast %cst_36 : f32 to vector<16x1xf32>
      %62 = arith.divf %60, %61 : vector<16x1xf32>
      %63 = vector.broadcast %62 : vector<16x1xf32> to vector<16x128xf32>
      %64 = arith.subf %58, %63 : vector<16x128xf32>
      %65 = arith.mulf %64, %64 : vector<16x128xf32>
      %cst_37 = arith.constant dense<0.000000e+00> : vector<16xf32>
      %66 = vector.multi_reduction <add>, %65, %cst_37 [1] : vector<16x128xf32> to vector<16xf32>
      %67 = vector.shape_cast %66 : vector<16xf32> to vector<16x1xf32>
      %cst_38 = arith.constant 1.280000e+02 : f32
      %68 = vector.broadcast %cst_38 : f32 to vector<16x1xf32>
      %69 = arith.divf %67, %68 : vector<16x1xf32>
      %70 = vector.broadcast %62 : vector<16x1xf32> to vector<16x128xf32>
      %71 = arith.subf %58, %70 : vector<16x128xf32>
      %cst_39 = arith.constant 9.99999996E-13 : f32
      %72 = vector.broadcast %cst_39 : f32 to vector<16x1xf32>
      %73 = arith.addf %69, %72 : vector<16x1xf32>
      %74 = math.rsqrt %73 : vector<16x1xf32>
      %75 = vector.broadcast %74 : vector<16x1xf32> to vector<16x128xf32>
      %76 = arith.mulf %71, %75 : vector<16x128xf32>
      %77 = vector.broadcast %13 : vector<1x128xf32> to vector<16x128xf32>
      %78 = arith.mulf %76, %77 : vector<16x128xf32>
      %79 = vector.broadcast %14 : vector<1x128xf32> to vector<16x128xf32>
      %80 = arith.addf %78, %79 : vector<16x128xf32>
      %81 = arith.truncf %80 : vector<16x128xf32> to vector<16x128xbf16>
      %c0_40 = arith.constant 0 : index
      %c0_41 = arith.constant 0 : index
      %82 = vector.load %arg10[%c0_40, %c0_41] : memref<16x128xbf16, #tpu.memory_space<vmem>>, vector<16x128xbf16>
      tpu.vector_store %arg10[%c0_40, %c0_41], %81 {strides = array<i32>} : memref<16x128xbf16, #tpu.memory_space<vmem>>, vector<16x128xbf16>,
    } else {
    }
    %c0 = arith.constant 0 : index
    %c0_1 = arith.constant 0 : index
    %3 = vector.load %arg10[%c0, %c0_1] : memref<16x128xbf16, #tpu.memory_space<vmem>>, vector<16x128xbf16>
    %c0_2 = arith.constant 0 : index
    %c0_3 = arith.constant 0 : index
    %4 = vector.load %arg7[%c0_2, %c0_3] : memref<128x1024xbf16, #tpu.memory_space<vmem>>, vector<128x1024xbf16>
    %cst = arith.constant dense<0.000000e+00> : vector<16x1024xf32>
    %5 = tpu.matmul %3, %4, %cst {dimension_numbers = #tpu.dot_dimension_numbers<[1], [0], [0], [1], [0, 0, 1, 1], [], []>} : vector<16x128xbf16>, vector<128x1024xbf16>, vector<16x1024xf32> -> vector<16x1024xf32>
    %c0_4 = arith.constant 0 : index
    %c0_5 = arith.constant 0 : index
    %6 = vector.load %arg8[%c0_4, %c0_5] : memref<1x1024xf32, #tpu.memory_space<vmem>>, vector<1x1024xf32>
    %7 = vector.broadcast %6 : vector<1x1024xf32> to vector<16x1024xf32>
    %8 = arith.addf %5, %7 : vector<16x1024xf32>
    %c0_6 = arith.constant 0 : index
    %c0_7 = arith.constant 0 : index
    %9 = vector.load %arg9[%c0_6, %c0_7] : memref<16x1024xf32, #tpu.memory_space<vmem>>, vector<16x1024xf32>
    tpu.vector_store %arg9[%c0_6, %c0_7], %8 {strides = array<i32>} : memref<16x1024xf32, #tpu.memory_space<vmem>>, vector<16x1024xf32>,
    return
  }
  func.func @transform_0(%arg0: i32, %arg1: i32) -> (i32, i32) {
    %c0_i32 = arith.constant 0 : i32
    %c0_i32_0 = arith.constant 0 : i32
    return %arg0, %c0_i32 : i32, i32
  }
  func.func @transform_1(%arg0: i32, %arg1: i32) -> (i32, i32) {
    %c0_i32 = arith.constant 0 : i32
    %c0_i32_0 = arith.constant 0 : i32
    %c0_i32_1 = arith.constant 0 : i32
    return %c0_i32, %c0_i32_0 : i32, i32
  }
  func.func @transform_2(%arg0: i32, %arg1: i32) -> (i32, i32) {
    %c0_i32 = arith.constant 0 : i32
    %c0_i32_0 = arith.constant 0 : i32
    %c0_i32_1 = arith.constant 0 : i32
    return %c0_i32, %c0_i32_0 : i32, i32
  }
  func.func @transform_3(%arg0: i32, %arg1: i32) -> (i32, i32) {
    %c0_i32 = arith.constant 0 : i32
    %c0_i32_0 = arith.constant 0 : i32
    %c0_i32_1 = arith.constant 0 : i32
    return %c0_i32, %c0_i32_0 : i32, i32
  }
  func.func @transform_4(%arg0: i32, %arg1: i32) -> (i32, i32) {
    %c0_i32 = arith.constant 0 : i32
    %c0_i32_0 = arith.constant 0 : i32
    %c0_i32_1 = arith.constant 0 : i32
    return %c0_i32, %c0_i32_0 : i32, i32
  }
  func.func @transform_5(%arg0: i32, %arg1: i32) -> (i32, i32) {
    %c0_i32 = arith.constant 0 : i32
    %c0_i32_0 = arith.constant 0 : i32
    return %c0_i32, %arg1 : i32, i32
  }
  func.func @transform_6(%arg0: i32, %arg1: i32) -> (i32, i32) {
    %c0_i32 = arith.constant 0 : i32
    %c0_i32_0 = arith.constant 0 : i32
    return %c0_i32, %arg1 : i32, i32
  }
  func.func @transform_7(%arg0: i32, %arg1: i32) -> (i32, i32) {
    %c0_i32 = arith.constant 0 : i32
    return %arg0, %arg1 : i32, i32
  }
}

</mosaic_0001>

<bundles_post_ra>
// kernel: tpu_custom_call.1
= control target key start
LH: loop header
LB: loop body
LE: loop exit
PB: predicated region body
PF: predicated region fallthrough
CT: control target
= control target key end

     0   :  { %s2134_s0 = inlined_call_operand.hbm [shape: f32[32,128], index: 0, kind: input, shape index: {}]   ;;  %s2135_s1 = inlined_call_operand.hbm [shape: f32[128,128], index: 1, kind: input, shape index: {}]   ;;  %s2136_s2 = inlined_call_operand.vmem [shape: f32[1,128], index: 2, kind: input, shape index: {}]   ;;  %s2137_s3 = inlined_call_operand.vmem [shape: f32[1,128], index: 3, kind: input, shape index: {}]   ;;  %s2138_s4 = inlined_call_operand.hbm [shape: f32[1,128], index: 4, kind: input, shape index: {}]   ;;  %s2139_s5 = inlined_call_operand.hbm [shape: bf16[128,1024], index: 5, kind: input, shape index: {}]   ;;  %s2140_s6 = inlined_call_operand.vmem [shape: f32[1,1024], index: 6, kind: input, shape index: {}]   ;;  %s2141_s7 = inlined_call_operand.hbm [shape: f32[32,1024], index: 7, kind: output, shape index: {}]  }
   0x1   :  { %2148 = sst [smem:[#allocation16_spill]] %s2135_s1 }
   0x2   :  { %2149 = sst [smem:[#allocation17_spill]] %s2138_s4 }
   0x3   :  { %2150 = sst [smem:[#allocation18_spill]] %s2139_s5 }
   0x4   :  { %12 = vsyncpa [#allocation4], 0 }
   0x5   :  { %14 = vsyncpa [#allocation4 + $0x1], 0 }
   0x6   :  { %15 = vsyncpa [#allocation7], 0 }
   0x7   :  { %16 = vsyncpa [#allocation10], 0 }
   0x8   :  { %17 = vsyncpa [#allocation5], 0 }
   0x9   :  { %19 = vsyncpa [#allocation5 + $0x1], 0  ;;  %s1879_s24 = smov 0   ;;  %s1881_s25 = smov 0  }
   0xa   :  { %s1883_s26 = smov 0   ;;  %s1885_s27 = smov 0  }
   0xb   :  { %s1887_s28 = smov 0   ;;  %s1889_s29 = smov 0  }
   0xc LB: > { %s1360_s30 = sadd.s32 4294967295, %s1824_s29   ;;  %s1361_s8 = sadd.s32 4294967294, %s1824_s29   ;;  %s1824_s29 = sphi %s1889_s29, %s25_s29   ;;  %s1820_s28 = sphi %s1887_s28, %s2173_s28   ;;  %s1816_s27 = sphi %s1885_s27, %s2172_s27   ;;  %s1812_s26 = sphi %s1883_s26, %s2171_s26   ;;  %s1808_s25 = sphi %s1881_s25, %s2170_s25   ;;  %s1804_s24 = sphi %s1879_s24, %s2169_s24  }
   0xd   : > { %p57_p0 = scmp.ne.s32.totalorder %s1808_s25, %s1804_s24  ;;  %p1913_p1 = scmp.eq.s32.totalorder %s1360_s30, 0 }
   0xe   : > { %p1917_p2 = scmp.eq.s32.totalorder %s1360_s30, 1  ;;  %p225_p3 = scmp.eq.s32.totalorder %s1361_s8, 1 }
   0xf   : > { %s2151_s9 = scalar_select %p1913_p1, 1, 0 }
  0x10   : > { %p1923_p4 = por %p1913_p1, %p57_p0  ;;  %p1362_p5 = scmp.ge.s32.totalorder %s1824_s29, 1 }
  0x11   : > { %p1928_p6 = por %p225_p3, %p57_p0  ;;  %p232_p7 = scmp.lt.s32.totalorder %s1824_s29, 3 }
  0x12   : > { %s2153_s11 = scalar_select %p1923_p4, 1, 0 }
  0x13   : > { %s2154_s12 = scalar_select %p1928_p6, 1, 0 }
  0x14   : > { %p1933_p8 = pnand %p1362_p5, %p232_p7  ;;  %s1826_s14 = smov [#allocation6]  }
  0x15   : > { %s244_s15 = sshll.u32 %s1826_s14, 4  ;;  %s1827_s17 = smov [#allocation8]   ;;  %s245_s15 = int_to_ptr.vmem [resolvable:$true] %s244_s15 }
  0x16   : > { %s2155_s13 = scalar_select %p1933_p8, 1, 0 }
  0x17   : > { %p1532_p9 = pneg %p1933_p8  ;;  %s264_s18 = sshll.u32 %s1827_s17, 4  ;;  %s265_s18 = int_to_ptr.vmem [resolvable:$true] %s264_s18 }
  0x18   : > { %s1828_s19 = smov [#allocation9]   ;;  %s1641_s21 = scalar_lea.vmem %s245_s15, 2048 }
  0x19   : > { %p1942_p11 = pnand %p1532_p9, %p1913_p1  ;;  %s277_s20 = sshll.u32 %s1828_s19, 4  ;;  %s278_s20 = int_to_ptr.vmem [resolvable:$true] %s277_s20 }
  0x1a   : > { %p1642_p13 = scmp.ne.s32.totalorder %s245_s15, %s1641_s21  ;;  %p1649_p5 = scmp.lt.s32.totalorder %s245_s15, %s245_s15 }
  0x1b   : > { %p1632_p12 = pneg %p1942_p11  ;;  %p1650_p7 = scmp.lt.s32.totalorder %s1641_s21, %s1641_s21 }
  0x1d   : > { %p1644_p0 = pnand %p1642_p13, %p1632_p12  ;;  %p1651_p9 = por %p1650_p7, %p1649_p5 }
  0x1f   : > { %p1645_p3 = pneg %p1644_p0 }
  0x21   : > { %p1652_p10 = pnand %p1651_p9, %p1645_p3 }
  0x23   : > { %1655 = shalt.err (!%p1652_p10)
}
  0x24   : > { %s2146_s22 = smov 128   ;;  %s2147_s23 = smov 8  }
  0x25   : > { %s2157_s1 = sld [smem:[#allocation16_spill]]  ;;  %s1667_s14 = scalar_lea.vmem %s265_s18, 16 }
  0x26   : > { %p1668_p13 = scmp.ne.s32.totalorder %s265_s18, %s1667_s14  ;;  %s1674_s17 = scalar_lea.vmem %s265_s18, 32 }
  0x27   : > { %p1675_p10 = scmp.lt.s32.totalorder %s265_s18, %s265_s18  ;;  %p1676_p3 = scmp.lt.s32.totalorder %s1674_s17, %s1667_s14 }
  0x28   : > { %p1670_p0 = pnand %p1668_p13, %p1632_p12 }
  0x29   : > { %p1677_p7 = por %p1676_p3, %p1675_p10 }
  0x2a   : > { %p1671_p5 = pneg %p1670_p0 }
  0x2b   : > { %1535 = dma.hbm_to_vmem [thread:$0]  (!%p1942_p11), %s2157_s1, 2048, %s245_s15, [#allocation7], %s2146_s22, %s2146_s22, %s2147_s23  }
  0x2c   : > { %p1678_p9 = pnand %p1677_p7, %p1671_p5 }
  0x2e   : > { %1681 = shalt.err (!%p1678_p9)
}
  0x2f   : > { %s2158_s4 = sld [smem:[#allocation17_spill]]  ;;  %s1693_s15 = scalar_lea.vmem %s278_s20, 8192 }
  0x30   : > { %p1694_p6 = scmp.ne.s32.totalorder %s278_s20, %s1693_s15  ;;  %p1701_p1 = scmp.lt.s32.totalorder %s278_s20, %s278_s20 }
  0x31   : > { %p1702_p4 = scmp.lt.s32.totalorder %s1693_s15, %s1693_s15 }
  0x32   : > { %p1696_p13 = pnand %p1694_p6, %p1632_p12 }
  0x33   : > { %p1703_p8 = por %p1702_p4, %p1701_p1 }
  0x34   : > { %p1697_p0 = pneg %p1696_p13 }
  0x35   : > { %1538 = dma.hbm_to_vmem [thread:$0]  (!%p1942_p11), %s2158_s4, 16, %s265_s18, [#allocation7]  }
  0x36   : > { %p1704_p10 = pnand %p1703_p8, %p1697_p0 }
  0x38   : > { %1707 = shalt.err (!%p1704_p10)
}
  0x39   : > { %s1831_s30 = smov 512   ;;  %s1832_s18 = smov 32  }
  0x3a   : > { %s2159_s5 = sld [smem:[#allocation18_spill]]  ;;  %s44_s17 = sadd.s32 1, %s1812_s26 }
  0x3b   : > { %s37_s19 = sadd.s32 1, %s1820_s28  ;;  %p51_p1 = scmp.ne.s32.totalorder %s1812_s26, %s1808_s25 }
  0x3c   : > { %p39_p4 = scmp.ge.s32.totalorder %s37_s19, 2  ;;  %p52_p6 = scmp.eq.s32.totalorder %s1824_s29, 0 }
  0x3d   : > { %p1982_p8 = por %p1917_p2, %p51_p1  ;;  %p1553_p12 = scmp.lt.s32.totalorder %s1824_s29, 2 }
  0x3e   : > { %s2175_s19 = smov (%p39_p4, %s37_s19), 0  ;;  %p53_p5 = por %p52_p6, %p51_p1 }
  0x3f   : > { %s299_s16 = sand.u32 1, %s1812_s26   ;;  %s41_s15 = ssub.s32 %s1820_s28, %s2175_s19 }
  0x40   : > { %1541 = dma.hbm_to_vmem [thread:$0]  (!%p1942_p11), %s2159_s5, 8192, %s278_s20, [#allocation10], %s1831_s30, %s1831_s30, %s1832_s18  }
  0x41   : > { %p42_p3 = scmp.eq.s32.totalorder %s41_s15, 0  ;;  %s1368_s20 = sshll.u32 %s299_s16, 4 }
  0x42   : > { %s1453_s30 = sshll.u32 %s1820_s28, 8  ;;  %s303_s22 = scalar_lea.vmem [#allocation3], %s1368_s20 }
  0x43   : > { %s1994_s18 = scalar_select %p42_p3, %s1812_s26, %s44_s17  }
  0x44   : > { %s309_s10 = scalar_lea.hbm %s2134_s0, %s1453_s30  ;;  %s310_s23 = sshll.u32 %s303_s22, 4  ;;  %s311_s23 = int_to_ptr.vmem [resolvable:$true] %s310_s23 }
  0x45   : > { %p2001_p2 = pnand %p1553_p12, %p53_p5  ;;  %s300_s4 = scalar_lea.sflag [#allocation4], %s299_s16 }
  0x46   : > { %s1721_s15 = scalar_lea.vmem %s311_s23, 256  ;;  %s1833_s17 = smov [#allocation3]  }
  0x47   : > { %p1710_p11 = pneg %p2001_p2  ;;  %p1722_p7 = scmp.ne.s32.totalorder %s311_s23, %s1721_s15 }
  0x48   : > { %s1726_s5 = sshll.u32 %s1833_s17, 4  ;;  %s1727_s5 = int_to_ptr.vmem [resolvable:$false] %s1726_s5 }
  0x49   : > { %p1724_p9 = pnand %p1722_p7, %p1710_p11  ;;  %s1728_s30 = scalar_lea.vmem %s1727_s5, 512 }
  0x4a   : > { %p1729_p0 = scmp.lt.s32.totalorder %s311_s23, %s1727_s5  ;;  %p1730_p10 = scmp.lt.s32.totalorder %s1728_s30, %s1721_s15 }
  0x4b   : > { %p1725_p13 = pneg %p1724_p9 }
  0x4c   : > { %p1731_p1 = por %p1730_p10, %p1729_p0 }
  0x4e   : > { %p1732_p4 = pnand %p1731_p1, %p1725_p13 }
  0x50   : > { %1735 = shalt.err (!%p1732_p4)
}
  0x51   : > { %s2162_s22 = smov 8   ;;  %s2163_s20 = smov 128  }
  0x52   : > { %1545 = dma.hbm_to_vmem [thread:$0]  (!%p2001_p2), %s309_s10, 256, %s311_s23, %s300_s4, %s2163_s20, %s2163_s20, %s2162_s22  }
  0x53   : > { %p2164_p6 = scmp.ne.s32.totalorder %s2155_s13, 0 }
  0x54   : > { %s2015_s16 = sand.u32 (!%p2164_p6), 1, %s1808_s25   ;;  %p2165_p12 = scmp.ne.s32.totalorder (!%p2164_p6), %s2153_s11, 0 }
  0x55   : > { %322 = sbr.rel (%p2164_p6) target bundleno = 943 (0x3af), region = 48  ;;  %s1372_s5 = sshll.u32 (!%p2164_p6), %s2015_s16, 4 }
  0x56   : > { %s325_s8 = scalar_lea.sflag (!%p2164_p6), [#allocation4], %s2015_s16  ;;  %s2019_s14 = scalar_lea.vmem (!%p2164_p6), [#allocation3], %s1372_s5 }
  0x5a   : > { %1787 = dma.done.wait (%p2165_p12), %s325_s8, 256  }
  0x5b   : > { %1789 = vsyncadd (%p2165_p12), %s325_s8, 4294967040  ;;  %p2166_p5 = scmp.ne.s32.totalorder %s2151_s9, 0 }
  0x5d   : > { %1791 = dma.done.wait (%p2166_p5), [#allocation7], 2064  }
  0x5e   : > { %1793 = vsyncadd (%p2166_p5), [#allocation7], 4294965232 }
  0x5f   : > { %1795 = dma.done.wait (%p2166_p5), [#allocation10], 8192  }
  0x60   : > { %1797 = vsyncadd (%p2166_p5), [#allocation10], 4294959104  ;;  %v406_v0 = vld [vmem:[#allocation6 + $0x78] sm:$0xff]  ;;  %v405_v1 = vld [vmem:[#allocation6 + $0x70] sm:$0xff]  ;;  %v1834_v63 = vmov -1.0   ;;  %s1376_s10 = sshll.u32 %s2015_s16, 7 }
  0x61   : > { %1481 = vmatprep.subr.mxu0 %v406_v0  ;;  %v404_v2 = vld [vmem:[#allocation6 + $0x68] sm:$0xff]  ;;  %v403_v3 = vld [vmem:[#allocation6 + $0x60] sm:$0xff]  ;;  %v402_v5 = vld [vmem:[#allocation6 + $0x58] sm:$0xff]  ;;  %s2061_s15 = scalar_lea.vmem [#allocation11], %s1376_s10  ;;  %s1457_s17 = sshll.u32 %s1816_s27, 11 }
  0x62   : > { %1482 = vmatpush3.msra.mxu0 %v406_v0  ;;  %v389_v4 = vld [vmem:[%s2019_s14] sm:$0xff]  ;;  %v400_v7 = vld [vmem:[#allocation6 + $0x48] sm:$0xff]  ;;  %v398_v9 = vld [vmem:[#allocation6 + $0x38] sm:$0xff]  ;;  %s1233_s30 = sshll.u32 %s2061_s15, 4  ;;  %s2080_s5 = scalar_lea.hbm %s2141_s7, %s1457_s17  ;;  %s2082_s30 = int_to_ptr.vmem [resolvable:$true] %s1233_s30 }
  0x63   : > { %1483 = vmatprep.subr.mxu0 %v405_v1  ;;  %1513 = vmatprep.mubr.f32.mxu0 %v389_v4  ;;  %v401_v6 = vld [vmem:[#allocation6 + $0x50] sm:$0xff]  ;;  %v399_v8 = vld [vmem:[#allocation6 + $0x40] sm:$0xff]  ;;  %v396_v11 = vld [vmem:[#allocation6 + $0x28] sm:$0xff]  ;;  %s1217_s27 = scalar_lea.sflag [#allocation5], %s2015_s16  ;;  %s1736_s8 = scalar_lea.vmem %s2082_s30, 2048 }
  0x64   : > { %1484 = vmatpush3.msra.mxu0 %v405_v1  ;;  %v397_v10 = vld [vmem:[#allocation6 + $0x30] sm:$0xff]  ;;  %v395_v12 = vld [vmem:[#allocation6 + $0x20] sm:$0xff]  ;;  %v394_v13 = vld [vmem:[#allocation6 + $0x18] sm:$0xff]  ;;  %p1737_p3 = scmp.ne.s32.totalorder %s2082_s30, %s1736_s8 }
  0x65   : > { %1485 = vmatprep.subr.mxu0 %v404_v2  ;;  %v393_v14 = vld [vmem:[#allocation6 + $0x10] sm:$0xff]  ;;  %v392_v15 = vld [vmem:[#allocation6 + $0x8] sm:$0xff]  ;;  %v391_v16 = vld [vmem:[#allocation6] sm:$0xff] }
  0x66   : > { %1486 = vmatpush3.msra.mxu0 %v404_v2  ;;  %v390_v17 = vld [vmem:[%s2019_s14 + $0x8] sm:$0xff]  ;;  %p1738_p2 = pnand %p1737_p3, %p1982_p8  ;;  %s1836_s14 = smov [#allocation11]  }
  0x67   : > { %1487 = vmatprep.subr.mxu0 %v403_v3  ;;  %v1377_v18 = vld [vmem:[%s2136_s2] ss:$0 sm:$0xff]  ;;  %s1740_s1 = sshll.u32 %s1836_s14, 4  ;;  %s1741_s1 = int_to_ptr.vmem [resolvable:$false] %s1740_s1 }
  0x68   : > { %1488 = vmatpush3.msra.mxu0 %v403_v3  ;;  %p1739_p11 = pneg %p1738_p2  ;;  %s1742_s4 = scalar_lea.vmem %s1741_s1, 4096 }
  0x69   : > { %1489 = vmatprep.subr.mxu0 %v402_v5  ;;  %p1743_p7 = scmp.lt.s32.totalorder %s2082_s30, %s1741_s1  ;;  %p1744_p9 = scmp.lt.s32.totalorder %s1742_s4, %s1736_s8 }
  0x6a   : > { %1490 = vmatpush3.msra.mxu0 %v402_v5 }
  0x6b   : > { %1491 = vmatprep.subr.mxu0 %v401_v6  ;;  %p1745_p13 = por %p1744_p9, %p1743_p7 }
  0x6c   : > { %1492 = vmatpush3.msra.mxu0 %v401_v6 }
  0x6d   : > { %1493 = vmatprep.subr.mxu0 %v400_v7  ;;  %p1746_p0 = pnand %p1745_p13, %p1739_p11 }
  0x6e   : > { %1494 = vmatpush3.msra.mxu0 %v400_v7 }
  0x6f   : > { %1495 = vmatprep.subr.mxu0 %v399_v8 }
  0x70   : > { %1496 = vmatpush3.msra.mxu0 %v399_v8 }
  0x71   : > { %1497 = vmatprep.subr.mxu0 %v398_v9 }
  0x72   : > { %1498 = vmatpush3.msra.mxu0 %v398_v9 }
  0x73   : > { %1499 = vmatprep.subr.mxu0 %v397_v10 }
  0x74   : > { %1500 = vmatpush3.msra.mxu0 %v397_v10 }
  0x75   : > { %1501 = vmatprep.subr.mxu0 %v396_v11 }
  0x76   : > { %1502 = vmatpush3.msra.mxu0 %v396_v11 }
  0x77   : > { %1503 = vmatprep.subr.mxu0 %v395_v12 }
  0x78   : > { %1504 = vmatpush3.msra.mxu0 %v395_v12 }
  0x79   : > { %1505 = vmatprep.subr.mxu0 %v394_v13 }
  0x7a   : > { %1506 = vmatpush3.msra.mxu0 %v394_v13 }
  0x7b   : > { %1507 = vmatprep.subr.mxu0 %v393_v14 }
  0x7c   : > { %1508 = vmatpush3.msra.mxu0 %v393_v14 }
  0x7d   : > { %1509 = vmatprep.subr.mxu0 %v392_v15 }
  0x7e   : > { %1510 = vmatpush3.msra.mxu0 %v392_v15 }
  0x7f   : > { %1511 = vmatprep.subr.mxu0 %v391_v16 }
  0x80   : > { %1512 = vmatpush3.msra.mxu0 %v391_v16 }
  0x81   : > { %1514 = vmatmul.mubr.f32.vlgmr.msra.gmra.mxu0 %v390_v17 }
 0x141   : > { %v1515_v19 = vpop.f32.mrf.mxu0 }
 0x142   : > { %v488_v20 = vadd.f32 %v1515_v19, %v1377_v18  ;;  %v656_v19 = vld [vmem:[#allocation9 + $0x1e0] sm:$0xff] }
 0x143   : > { %v482_v21 = vpop.f32.mrf.mxu0 }
 0x144   : > { %v494_v22 = vmul.f32 0.70710677, %v488_v20  ;;  %v483_v23 = vadd.f32 %v1377_v18, %v482_v21  ;;  %v492_v8 = vmul.f32 0.5, %v488_v20  ;;  %v652_v18 = vld [vmem:[#allocation9 + $0x1c0] sm:$0xff]  ;;  %v653_v20 = vld [vmem:[#allocation9 + $0x1c8] sm:$0xff] }
 0x145   : > { %v1440_v21 = vcombine.high %v652_v18, %v656_v19 }
 0x146   : > { %v500_v24 = vand.u32 2147483647, %v494_v22  ;;  %v493_v25 = vmul.f32 0.70710677, %v483_v23  ;;  %vm496_vm0 = vcmp.ge.f32.partialorder %v494_v22, 0.0  ;;  %v491_v4 = vmul.f32 0.5, %v483_v23 }
 0x147   : > { %v498_v1 = vsel %vm496_vm0, 1.0, %v1834_v63  ;;  %v657_v22 = vld [vmem:[#allocation9 + $0x1e8] sm:$0xff]  ;;  %1028 = vmatprep.subr.bf16.mxu1 %v1440_v21 }
 0x148   : > { %v502_v26 = vmul.f32 0.3275911, %v500_v24  ;;  %v499_v27 = vand.u32 2147483647, %v493_v25  ;;  %v528_v31 = vsub.f32 0.0, %v500_v24  ;;  %vm495_vm1 = vcmp.ge.f32.partialorder %v493_v25, 0.0 }
 0x149   : > { %v497_v0 = vsel %vm495_vm1, 1.0, %v1834_v63  ;;  %v1441_v23 = vcombine.low %v653_v20, %v657_v22  ;;  %v1439_v25 = vcombine.low %v652_v18, %v656_v19  ;;  %v654_v18 = vld [vmem:[#allocation9 + $0x1d0] sm:$0xff] }
 0x14a   : > { %v504_v28 = vadd.f32 1.0, %v502_v26  ;;  %v501_v29 = vmul.f32 0.3275911, %v499_v27  ;;  %v527_v32 = vsub.f32 0.0, %v499_v27  ;;  %v530_v33 = vmul.f32 %v528_v31, %v500_v24  ;;  %v644_v26 = vld [vmem:[#allocation9 + $0x180] sm:$0xff]  ;;  %v658_v19 = vld [vmem:[#allocation9 + $0x1f0] sm:$0xff] }
 0x14b   : > { %v1442_v24 = vcombine.high %v653_v20, %v657_v22  ;;  %1029 = vmatpush1.bf16.msra.mxu1 %v1439_v25  ;;  %v1835_v22 = vmov 0   ;;  %v659_v25 = vld [vmem:[#allocation9 + $0x1f8] sm:$0xff] }
 0x14c   : > { %1618 = vrcp.f32 %v504_v28  ;;  %v503_v30 = vadd.f32 1.0, %v501_v29  ;;  %v529_v35 = vmul.f32 %v527_v32, %v499_v27  ;;  %v533_v36 = vmul.f32 1.442695, %v530_v33  ;;  %v648_v27 = vld [vmem:[#allocation9 + $0x1a0] sm:$0xff]  ;;  %v645_v28 = vld [vmem:[#allocation9 + $0x188] sm:$0xff]  ;;  %1060 = vmatprep.mubr.bf16.mxu1 %v1835_v22  ;;  %1103 = vmatprep.mubr.bf16.mxu0 %v1835_v22 }
 0x14d   : > { %1071 = vmatprep.subr.bf16.mxu0 %v1442_v24  ;;  %v1432_v29 = vcombine.high %v644_v26, %v648_v27  ;;  %v1431_v33 = vcombine.low %v644_v26, %v648_v27  ;;  %v655_v24 = vld [vmem:[#allocation9 + $0x1d8] sm:$0xff]  ;;  %v1444_v26 = vcombine.high %v654_v18, %v658_v19 }
 0x14e   : > { %1620 = vrcp.f32 %v503_v30  ;;  %v531_v40 = vmul.f32 1.442695, %v529_v35  ;;  %1072 = vmatpush1.bf16.msra.mxu0 %v1441_v23  ;;  %v649_v30 = vld [vmem:[#allocation9 + $0x1a8] sm:$0xff]  ;;  %v640_v35 = vld [vmem:[#allocation9 + $0x160] sm:$0xff]  ;;  %v1443_v23 = vcombine.low %v654_v18, %v658_v19  ;;  %v1445_v27 = vcombine.low %v655_v24, %v659_v25 }
 0x14f   : > { %1622 = vpow2.f32 %v533_v36  ;;  %v1433_v31 = vcombine.low %v645_v28, %v649_v30  ;;  %v1434_v32 = vcombine.high %v645_v28, %v649_v30  ;;  %1030 = vmatprep.subr.bf16.mxu1 %v1432_v29  ;;  %v637_v36 = vld [vmem:[#allocation9 + $0x148] sm:$0xff]  ;;  %v1446_v28 = vcombine.high %v655_v24, %v659_v25  ;;  %v611_v24 = vld [vmem:[#allocation9 + $0x78] sm:$0xff] }
 0x150   : > { %1624 = vpow2.f32 %v531_v40  ;;  %1031 = vmatpush1.bf16.msra.mxu1 %v1431_v33 }
 0x151   : > { %1073 = vmatprep.subr.bf16.mxu0 %v1434_v32 }
 0x152   : > { %1074 = vmatpush1.bf16.msra.mxu0 %v1433_v31 }
 0x159   : > { %v1619_v34 = vpop.eup %1618 }
 0x15a   : > { %v510_v37 = vmul.f32 1.0614054, %v1619_v34 }
 0x15b   : > { %v1621_v38 = vpop.eup %1620 }
 0x15c   : > { %v512_v39 = vadd.f32 -1.4531521, %v510_v37  ;;  %v509_v41 = vmul.f32 1.0614054, %v1621_v38  ;;  %v1623_v55 = vpop.eup %1622 }
 0x15d   : > { %v1625_v59 = vpop.eup %1624 }
 0x15e   : > { %v514_v42 = vmul.f32 %v1619_v34, %v512_v39  ;;  %v511_v43 = vadd.f32 -1.4531521, %v509_v41 }
 0x160   : > { %v516_v44 = vadd.f32 1.4214138, %v514_v42  ;;  %v513_v45 = vmul.f32 %v1621_v38, %v511_v43  ;;  %v628_v42 = vld [vmem:[#allocation9 + $0x100] sm:$0xff] }
 0x161   : > { %v632_v43 = vld [vmem:[#allocation9 + $0x120] sm:$0xff] }
 0x162   : > { %v518_v46 = vmul.f32 %v1619_v34, %v516_v44  ;;  %v515_v47 = vadd.f32 1.4214138, %v513_v45  ;;  %v629_v44 = vld [vmem:[#allocation9 + $0x108] sm:$0xff]  ;;  %v1416_v45 = vcombine.high %v628_v42, %v632_v43 }
 0x164   : > { %v520_v48 = vadd.f32 -0.28449672, %v518_v46  ;;  %v517_v49 = vmul.f32 %v1621_v38, %v515_v47  ;;  %v633_v46 = vld [vmem:[#allocation9 + $0x128] sm:$0xff] }
 0x165   : > { %v1417_v47 = vcombine.low %v629_v44, %v633_v46 }
 0x166   : > { %v522_v50 = vmul.f32 %v1619_v34, %v520_v48  ;;  %v519_v51 = vadd.f32 -0.28449672, %v517_v49  ;;  %v1418_v48 = vcombine.high %v629_v44, %v633_v46  ;;  %v1415_v49 = vcombine.low %v628_v42, %v632_v43  ;;  %v646_v46 = vld [vmem:[#allocation9 + $0x190] sm:$0xff] }
 0x168   : > { %v524_v52 = vadd.f32 0.2548296, %v522_v50  ;;  %v521_v53 = vmul.f32 %v1621_v38, %v519_v51  ;;  %v620_v50 = vld [vmem:[#allocation9 + $0xc0] sm:$0xff] }
 0x169   : > { %v624_v51 = vld [vmem:[#allocation9 + $0xe0] sm:$0xff] }
 0x16a   : > { %v526_v54 = vmul.f32 %v1619_v34, %v524_v52  ;;  %v523_v56 = vadd.f32 0.2548296, %v521_v53  ;;  %v636_v34 = vld [vmem:[#allocation9 + $0x140] sm:$0xff]  ;;  %v621_v52 = vld [vmem:[#allocation9 + $0xc8] sm:$0xff]  ;;  %v1408_v53 = vcombine.high %v620_v50, %v624_v51 }
 0x16b   : > { %v1424_v37 = vcombine.high %v636_v34, %v640_v35  ;;  %v1423_v41 = vcombine.low %v636_v34, %v640_v35 }
 0x16c   : > { %v536_v57 = vmul.f32 %v1623_v55, %v526_v54  ;;  %v525_v58 = vmul.f32 %v1621_v38, %v523_v56  ;;  %v641_v38 = vld [vmem:[#allocation9 + $0x168] sm:$0xff] }
 0x16d   : > { %v1425_v39 = vcombine.low %v637_v36, %v641_v38  ;;  %v1426_v40 = vcombine.high %v637_v36, %v641_v38  ;;  %1032 = vmatprep.subr.bf16.mxu1 %v1424_v37  ;;  %v625_v54 = vld [vmem:[#allocation9 + $0xe8] sm:$0xff]  ;;  %v1378_v37 = vld [vmem:[%s2137_s3] ss:$0 sm:$0xff] }
 0x16e   : > { %v535_v60 = vmul.f32 %v1625_v59, %v525_v58  ;;  %v538_v61 = vsub.f32 1.0, %v536_v57  ;;  %1033 = vmatpush1.bf16.msra.mxu1 %v1423_v41  ;;  %v1409_v55 = vcombine.low %v621_v52, %v625_v54  ;;  %v1410_v56 = vcombine.high %v621_v52, %v625_v54  ;;  %v612_v58 = vld [vmem:[#allocation9 + $0x80] sm:$0xff]  ;;  %v1379_v41 = vld [vmem:[#allocation8] ss:$0 sm:$0xff] }
 0x16f   : > { %1075 = vmatprep.subr.bf16.mxu0 %v1426_v40  ;;  %1034 = vmatprep.subr.bf16.mxu1 %v1416_v45  ;;  %v1407_v57 = vcombine.low %v620_v50, %v624_v51  ;;  %v616_v59 = vld [vmem:[#allocation9 + $0xa0] sm:$0xff]  ;;  %v638_v50 = vld [vmem:[#allocation9 + $0x150] sm:$0xff]  ;;  %v639_v54 = vld [vmem:[#allocation9 + $0x158] sm:$0xff] }
 0x170   : > { %v537_v62 = vsub.f32 1.0, %v535_v60  ;;  %v540_v3 = vmul.f32 %v538_v61, %v498_v1  ;;  %1076 = vmatpush1.bf16.msra.mxu0 %v1425_v39  ;;  %v613_v60 = vld [vmem:[#allocation9 + $0x88] sm:$0xff]  ;;  %v1400_v61 = vcombine.high %v612_v58, %v616_v59  ;;  %v1399_v1 = vcombine.low %v612_v58, %v616_v59  ;;  %v630_v59 = vld [vmem:[#allocation9 + $0x110] sm:$0xff] }
 0x171   : > { %1077 = vmatprep.subr.bf16.mxu0 %v1418_v48  ;;  %v647_v48 = vld [vmem:[#allocation9 + $0x198] sm:$0xff] }
 0x172   : > { %v539_v2 = vmul.f32 %v537_v62, %v497_v0  ;;  %v542_v7 = vadd.f32 1.0, %v540_v3  ;;  %1035 = vmatpush1.bf16.msra.mxu1 %v1415_v49  ;;  %v617_v62 = vld [vmem:[#allocation9 + $0xa8] sm:$0xff]  ;;  %v608_v3 = vld [vmem:[#allocation9 + $0x60] sm:$0xff]  ;;  %v651_v49 = vld [vmem:[#allocation9 + $0x1b8] sm:$0xff] }
 0x173   : > { %1036 = vmatprep.subr.bf16.mxu1 %v1408_v53  ;;  %v1401_v63 = vcombine.low %v613_v60, %v617_v62  ;;  %v1402_v0 = vcombine.high %v613_v60, %v617_v62  ;;  %v1438_v52 = vcombine.high %v647_v48, %v651_v49  ;;  %v642_v53 = vld [vmem:[#allocation9 + $0x170] sm:$0xff]  ;;  %v635_v62 = vld [vmem:[#allocation9 + $0x138] sm:$0xff] }
 0x174   : > { %v541_v5 = vadd.f32 1.0, %v539_v2  ;;  %v544_v9 = vmul.f32 %v542_v7, %v492_v8  ;;  %1078 = vmatpush1.bf16.msra.mxu0 %v1417_v47  ;;  %v604_v2 = vld [vmem:[#allocation9 + $0x40] sm:$0xff]  ;;  %v650_v47 = vld [vmem:[#allocation9 + $0x1b0] sm:$0xff] }
 0x175   : > { %1079 = vmatprep.subr.bf16.mxu0 %v1410_v56  ;;  %v1436_v51 = vcombine.high %v646_v46, %v650_v47  ;;  %v1437_v56 = vcombine.low %v647_v48, %v651_v49  ;;  %v634_v60 = vld [vmem:[#allocation9 + $0x130] sm:$0xff] }
 0x176   : > { %v543_v6 = vmul.f32 %v541_v5, %v491_v4  ;;  %1037 = vmatpush1.bf16.msra.mxu1 %v1407_v57  ;;  %v605_v4 = vld [vmem:[#allocation9 + $0x48] sm:$0xff]  ;;  %v1392_v5 = vcombine.high %v604_v2, %v608_v3  ;;  %v1428_v57 = vcombine.high %v638_v50, %v642_v53 }
 0x177   : > { %1038 = vmatprep.subr.bf16.mxu1 %v1400_v61  ;;  %v631_v61 = vld [vmem:[#allocation9 + $0x118] sm:$0xff] }
 0x178   : > { %545 = vadd.xlane.f32.xlu0 %v543_v6  ;;  %1080 = vmatpush1.bf16.msra.mxu0 %v1409_v55  ;;  %v643_v55 = vld [vmem:[#allocation9 + $0x178] sm:$0xff] }
 0x179   : > { %1081 = vmatprep.subr.bf16.mxu0 %v1402_v0  ;;  %v1430_v58 = vcombine.high %v639_v54, %v643_v55  ;;  %v1429_v0 = vcombine.low %v639_v54, %v643_v55 }
 0x17a   : > { %1039 = vmatpush1.bf16.msra.mxu1 %v1399_v1  ;;  %v1420_v1 = vcombine.high %v630_v59, %v634_v60 }
 0x17b   : > { %1040 = vmatprep.subr.bf16.mxu1 %v1392_v5  ;;  %v623_v5 = vld [vmem:[#allocation9 + $0xd8] sm:$0xff] }
 0x17c   : > { %547 = vadd.xlane.f32.xlu0 %v544_v9  ;;  %1082 = vmatpush1.bf16.msra.mxu0 %v1401_v63  ;;  %v1427_v63 = vcombine.low %v638_v50, %v642_v53 }
 0x201   : > { %v546_v10 = vpop.xlane.xlu0 %545 }
 0x202   : > { %v550_v11 = vmul.f32 0.0078125, %v546_v10  ;;  %v596_v10 = vld [vmem:[#allocation9] sm:$0xff] }
 0x204   : > { %v2038_v12 = vsub.f32 %v543_v6, %v550_v11  ;;  %v609_v6 = vld [vmem:[#allocation9 + $0x68] sm:$0xff]  ;;  %v600_v11 = vld [vmem:[#allocation9 + $0x20] sm:$0xff] }
 0x205   : > { %v548_v13 = vpop.xlane.xlu0 %547  ;;  %v1393_v7 = vcombine.low %v605_v4, %v609_v6  ;;  %v1394_v8 = vcombine.high %v605_v4, %v609_v6  ;;  %v626_v4 = vld [vmem:[#allocation9 + $0xf0] sm:$0xff]  ;;  %v627_v6 = vld [vmem:[#allocation9 + $0xf8] sm:$0xff] }
 0x206   : > { %v551_v14 = vmul.f32 0.0078125, %v548_v13  ;;  %v554_v15 = vmul.f32 %v2038_v12, %v2038_v12  ;;  %v597_v13 = vld [vmem:[#allocation9 + $0x8] sm:$0xff]  ;;  %v1413_v18 = vcombine.low %v623_v5, %v627_v6 }
 0x207   : > { %1083 = vmatprep.subr.bf16.mxu0 %v1394_v8  ;;  %v1421_v8 = vcombine.low %v631_v61, %v635_v62 }
 0x208   : > { %v2042_v16 = vsub.f32 %v544_v9, %v551_v14  ;;  %556 = vadd.xlane.f32.xlu1 %v554_v15  ;;  %v1391_v9 = vcombine.low %v604_v2, %v608_v3  ;;  %v1384_v14 = vcombine.high %v596_v10, %v600_v11  ;;  %v601_v15 = vld [vmem:[#allocation9 + $0x28] sm:$0xff]  ;;  %1084 = vmatpush1.bf16.msra.mxu0 %v1393_v7  ;;  %v622_v3 = vld [vmem:[#allocation9 + $0xd0] sm:$0xff] }
 0x209   : > { %v1385_v20 = vcombine.low %v597_v13, %v601_v15  ;;  %v1386_v21 = vcombine.high %v597_v13, %v601_v15  ;;  %v1422_v2 = vcombine.high %v631_v61, %v635_v62  ;;  %v1419_v7 = vcombine.low %v630_v59, %v634_v60  ;;  %v618_v13 = vld [vmem:[#allocation9 + $0xb0] sm:$0xff]  ;;  %v619_v15 = vld [vmem:[#allocation9 + $0xb8] sm:$0xff] }
 0x20a   : > { %v555_v17 = vmul.f32 %v2042_v16, %v2042_v16  ;;  %1041 = vmatpush1.bf16.msra.mxu1 %v1391_v9  ;;  %v1412_v9 = vcombine.high %v622_v3, %v626_v4 }
 0x20b   : > { %1042 = vmatprep.subr.bf16.mxu1 %v1384_v14  ;;  %1085 = vmatprep.subr.bf16.mxu0 %v1386_v21  ;;  %v615_v14 = vld [vmem:[#allocation9 + $0x98] sm:$0xff]  ;;  %v606_v21 = vld [vmem:[#allocation9 + $0x50] sm:$0xff] }
 0x20c   : > { %558 = vadd.xlane.f32.xlu1 %v555_v17  ;;  %v1383_v17 = vcombine.low %v596_v10, %v600_v11  ;;  %1086 = vmatpush1.bf16.msra.mxu0 %v1385_v20  ;;  %v1414_v10 = vcombine.high %v623_v5, %v627_v6  ;;  %v614_v11 = vld [vmem:[#allocation9 + $0x90] sm:$0xff]  ;;  %v1406_v20 = vcombine.high %v615_v14, %v619_v15 }
 0x20d   : > { %1157 = vmatprep.subr.bf16.mxu0 %v1446_v28  ;;  %v1404_v19 = vcombine.high %v614_v11, %v618_v13  ;;  %v1403_v25 = vcombine.low %v614_v11, %v618_v13 }
 0x20e   : > { %1043 = vmatpush1.bf16.msra.mxu1 %v1383_v17  ;;  %v1411_v17 = vcombine.low %v622_v3, %v626_v4 }
 0x20f   : > { %1114 = vmatprep.subr.bf16.mxu1 %v1444_v26  ;;  %v1405_v26 = vcombine.low %v615_v14, %v619_v15 }
 0x291   : > { %v557_v29 = vpop.xlane.xlu1 %556 }
 0x292   : > { %v560_v30 = vmul.f32 0.0078125, %v557_v29  ;;  %v598_v29 = vld [vmem:[#allocation9 + $0x10] sm:$0xff] }
 0x294   : > { %v562_v31 = vadd.f32 1e-12, %v560_v30  ;;  %v602_v30 = vld [vmem:[#allocation9 + $0x30] sm:$0xff] }
 0x295   : > { %v559_v32 = vpop.xlane.xlu1 %558 }
 0x296   : > { %1626 = vrsqrt.f32 %v562_v31  ;;  %v561_v33 = vmul.f32 0.0078125, %v559_v32  ;;  %v599_v31 = vld [vmem:[#allocation9 + $0x18] sm:$0xff] }
 0x297   : > { %v603_v32 = vld [vmem:[#allocation9 + $0x38] sm:$0xff] }
 0x298   : > { %v563_v34 = vadd.f32 1e-12, %v561_v33 }
 0x29a   : > { %1628 = vrsqrt.f32 %v563_v34 }
 0x2a3   : > { %v1627_v35 = vpop.eup %1626 }
 0x2a4   : > { %v566_v36 = vmul.f32 %v1627_v35, %v2038_v12  ;;  %v1388_v35 = vcombine.high %v598_v29, %v602_v30 }
 0x2a6   : > { %v574_v39 = vmul.f32 %v1378_v37, %v566_v36  ;;  %v1390_v36 = vcombine.high %v599_v31, %v603_v32 }
 0x2a7   : > { %v1629_v38 = vpop.eup %1628 }
 0x2a8   : > { %v567_v40 = vmul.f32 %v1629_v38, %v2042_v16  ;;  %v582_v43 = vadd.f32 %v1379_v41, %v574_v39  ;;  %v1435_v16 = vcombine.low %v646_v46, %v650_v47  ;;  %v1389_v38 = vcombine.low %v599_v31, %v603_v32 }
 0x2a9   : > { %v662_v39 = vlaneseq }
 0x2aa   : > { %v575_v42 = vmul.f32 %v1378_v37, %v567_v40  ;;  %v1387_v37 = vcombine.low %v598_v29, %v602_v30 }
 0x2ab   : > { %v663_v40 = vshrl.u32 %v662_v39, 7 }
 0x2ac   : > { %v583_v44 = vadd.f32 %v1379_v41, %v575_v42 }
 0x2ad   : > { %v664_v41 = vsub.s32 0, %v663_v40  ;;  %v672_v42 = vsub.s32 2, %v663_v40  ;;  %v692_v3 = vsub.s32 7, %v663_v40 }
 0x2ae   : > { %v1461_v45 = vpack.c.bf16 %v583_v44, %v582_v43  ;;  %v660_v43 = vld [vmem:[%s2140_s6] sm:$0xff]  ;;  %v668_v44 = vsub.s32 1, %v663_v40 }
 0x2af   : > { %v665_v46 = vrot.slane %v660_v43, %v664_v41  ;;  %v673_v47 = vrot.slane %v660_v43, %v672_v42 }
 0x2b0   : > { %1462 = vst [vmem:[#allocation2] sm:$0xff] %v1461_v45   ;;  %v676_v45 = vsub.s32 3, %v663_v40  ;;  %v669_v48 = vrot.slane %v660_v43, %v668_v44 }
 0x2b2   : > { %v677_v49 = vrot.slane %v660_v43, %v676_v45 }
 0x2b7   : > { %v2051_v12 = vld [vmem:[#allocation2] sm:$0xff]  }
 0x2b8   : > { %1061 = vmatmul.mubr.bf16.vlgmr.msra.gmra.mxu1 %v2051_v12  ;;  %1104 = vmatmul.mubr.bf16.vlgmr.msra.gmra.mxu0 %v2051_v12 }
 0x2b9   : > { %1115 = vmatpush1.bf16.msra.mxu1 %v1443_v23  ;;  %1158 = vmatpush1.bf16.msra.mxu0 %v1445_v27  ;;  %v607_v23 = vld [vmem:[#allocation9 + $0x58] sm:$0xff] }
 0x2ba   : > { %1116 = vmatprep.subr.bf16.mxu1 %v1436_v51  ;;  %1159 = vmatprep.subr.bf16.mxu0 %v1438_v52  ;;  %v1398_v28 = vcombine.high %v607_v23, %v611_v24  ;;  %v1397_v34 = vcombine.low %v607_v23, %v611_v24 }
 0x2bb   : > { %1146 = vmatprep.mubr.bf16.mxu1 %v1835_v22  ;;  %1189 = vmatprep.mubr.bf16.mxu0 %v1835_v22  ;;  %v610_v22 = vld [vmem:[#allocation9 + $0x70] sm:$0xff] }
 0x2bc   : > { %v1396_v27 = vcombine.high %v606_v21, %v610_v22  ;;  %v1395_v33 = vcombine.low %v606_v21, %v610_v22 }
 0x2bd   : > { %1117 = vmatpush1.bf16.msra.mxu1 %v1435_v16  ;;  %1160 = vmatpush1.bf16.msra.mxu0 %v1437_v56 }
 0x2be   : > { %1118 = vmatprep.subr.bf16.mxu1 %v1428_v57  ;;  %1161 = vmatprep.subr.bf16.mxu0 %v1430_v58 }
 0x2c1   : > { %1119 = vmatpush1.bf16.msra.mxu1 %v1427_v63  ;;  %1162 = vmatpush1.bf16.msra.mxu0 %v1429_v0  ;;  %v680_v0 = vsub.s32 4, %v663_v40 }
 0x2c2   : > { %1120 = vmatprep.subr.bf16.mxu1 %v1420_v1  ;;  %1163 = vmatprep.subr.bf16.mxu0 %v1422_v2  ;;  %v688_v1 = vsub.s32 6, %v663_v40  ;;  %v684_v2 = vsub.s32 5, %v663_v40 }
 0x2c3   : > { %v681_v4 = vrot.slane %v660_v43, %v680_v0 }
 0x2c4   : > { %v689_v5 = vrot.slane %v660_v43, %v688_v1  ;;  %v685_v6 = vrot.slane %v660_v43, %v684_v2 }
 0x2c5   : > { %1121 = vmatpush1.bf16.msra.mxu1 %v1419_v7  ;;  %1164 = vmatpush1.bf16.msra.mxu0 %v1421_v8  ;;  %v693_v7 = vrot.slane %v660_v43, %v692_v3 }
 0x2c6   : > { %1122 = vmatprep.subr.bf16.mxu1 %v1412_v9  ;;  %1165 = vmatprep.subr.bf16.mxu0 %v1414_v10 }
 0x2c9   : > { %1123 = vmatpush1.bf16.msra.mxu1 %v1411_v17  ;;  %1166 = vmatpush1.bf16.msra.mxu0 %v1413_v18 }
 0x2ca   : > { %1124 = vmatprep.subr.bf16.mxu1 %v1404_v19  ;;  %1167 = vmatprep.subr.bf16.mxu0 %v1406_v20 }
 0x2cd   : > { %1125 = vmatpush1.bf16.msra.mxu1 %v1403_v25  ;;  %1168 = vmatpush1.bf16.msra.mxu0 %v1405_v26 }
 0x2ce   : > { %1126 = vmatprep.subr.bf16.mxu1 %v1396_v27  ;;  %1169 = vmatprep.subr.bf16.mxu0 %v1398_v28 }
 0x2d1   : > { %1127 = vmatpush1.bf16.msra.mxu1 %v1395_v33  ;;  %1170 = vmatpush1.bf16.msra.mxu0 %v1397_v34 }
 0x2d2   : > { %1128 = vmatprep.subr.bf16.mxu1 %v1388_v35  ;;  %1171 = vmatprep.subr.bf16.mxu0 %v1390_v36 }
 0x2d5   : > { %1129 = vmatpush1.bf16.msra.mxu1 %v1387_v37  ;;  %1172 = vmatpush1.bf16.msra.mxu0 %v1389_v38 }
 0x2d8   : > { %1147 = vmatmul.mubr.bf16.vlgmr.msra.gmra.mxu1 %v2051_v12  ;;  %1190 = vmatmul.mubr.bf16.vlgmr.msra.gmra.mxu0 %v2051_v12 }
 0x378   : > { %v1062_v50 = vpop.f32.mrf.mxu1  ;;  %v1105_v51 = vpop.f32.mrf.mxu0 }
 0x379   : > { %v1063_v52 = vadd.f32 %v1062_v50, %v665_v46  ;;  %v1106_v53 = vadd.f32 %v1105_v51, %v673_v47 }
 0x37a   : > { %v1064_v12 = vpop.f32.mrf.mxu1  ;;  %v1107_v54 = vpop.f32.mrf.mxu0 }
 0x37b   : > { %1200 = vst [vmem:[%s2061_s15] sm:$0xff] %v1063_v52  ;;  %1202 = vst [vmem:[%s2061_s15 + $0x10] sm:$0xff] %v1106_v53  ;;  %v1065_v55 = vadd.f32 %v1064_v12, %v669_v48  ;;  %v1108_v16 = vadd.f32 %v1107_v54, %v677_v49 }
 0x37c   : > { %v1066_v56 = vpop.f32.mrf.mxu1  ;;  %v1109_v57 = vpop.f32.mrf.mxu0 }
 0x37d   : > { %1201 = vst [vmem:[%s2061_s15 + $0x8] sm:$0xff] %v1065_v55  ;;  %1203 = vst [vmem:[%s2061_s15 + $0x18] sm:$0xff] %v1108_v16  ;;  %v1067_v58 = vadd.f32 %v1066_v56, %v665_v46  ;;  %v1110_v59 = vadd.f32 %v1109_v57, %v673_v47 }
 0x37e   : > { %v1068_v60 = vpop.f32.mrf.mxu1  ;;  %v1111_v61 = vpop.f32.mrf.mxu0 }
 0x37f   : > { %1208 = vst [vmem:[%s2061_s15 + $0x40] sm:$0xff] %v1067_v58  ;;  %1210 = vst [vmem:[%s2061_s15 + $0x50] sm:$0xff] %v1110_v59  ;;  %v1069_v62 = vadd.f32 %v1068_v60, %v669_v48  ;;  %v1112_v63 = vadd.f32 %v1111_v61, %v677_v49 }
 0x381   : > { %1209 = vst [vmem:[%s2061_s15 + $0x48] sm:$0xff] %v1069_v62  ;;  %1211 = vst [vmem:[%s2061_s15 + $0x58] sm:$0xff] %v1112_v63 }
 0x398   : > { %v1148_v8 = vpop.f32.mrf.mxu1  ;;  %v1191_v9 = vpop.f32.mrf.mxu0 }
 0x399   : > { %v1149_v10 = vadd.f32 %v1148_v8, %v681_v4  ;;  %v1192_v11 = vadd.f32 %v1191_v9, %v689_v5 }
 0x39a   : > { %v1150_v13 = vpop.f32.mrf.mxu1  ;;  %v1193_v14 = vpop.f32.mrf.mxu0 }
 0x39b   : > { %1204 = vst [vmem:[%s2061_s15 + $0x20] sm:$0xff] %v1149_v10  ;;  %1206 = vst [vmem:[%s2061_s15 + $0x30] sm:$0xff] %v1192_v11  ;;  %v1151_v15 = vadd.f32 %v1150_v13, %v685_v6  ;;  %v1194_v17 = vadd.f32 %v1193_v14, %v693_v7 }
 0x39c   : > { %v1152_v18 = vpop.f32.mrf.mxu1  ;;  %v1195_v19 = vpop.f32.mrf.mxu0 }
 0x39d   : > { %1205 = vst [vmem:[%s2061_s15 + $0x28] sm:$0xff] %v1151_v15  ;;  %1207 = vst [vmem:[%s2061_s15 + $0x38] sm:$0xff] %v1194_v17  ;;  %v1153_v20 = vadd.f32 %v1152_v18, %v681_v4  ;;  %v1196_v21 = vadd.f32 %v1195_v19, %v689_v5 }
 0x39e   : > { %v1154_v22 = vpop.f32.mrf.mxu1  ;;  %v1197_v23 = vpop.f32.mrf.mxu0 }
 0x39f   : > { %1212 = vst [vmem:[%s2061_s15 + $0x60] sm:$0xff] %v1153_v20  ;;  %1214 = vst [vmem:[%s2061_s15 + $0x70] sm:$0xff] %v1196_v21  ;;  %v1155_v24 = vadd.f32 %v1154_v22, %v685_v6  ;;  %v1198_v25 = vadd.f32 %v1197_v23, %v693_v7 }
 0x3a1   : > { %1213 = vst [vmem:[%s2061_s15 + $0x68] sm:$0xff] %v1155_v24  ;;  %1215 = vst [vmem:[%s2061_s15 + $0x78] sm:$0xff] %v1198_v25 }
 0x3a2   : > { %1749 = shalt.err (!%p1746_p0)
}
 0x3a3   : > { %s1750_s9 = scalar_lea.hbm %s2080_s5, 2048  ;;  %s1754_s23 = scalar_lea.hbm %s2141_s7, 4096 }
 0x3a4   : > { %p1751_p10 = scmp.ne.s32.totalorder %s2080_s5, %s1750_s9  ;;  %p1755_p6 = scmp.lt.s32.totalorder %s2080_s5, %s2141_s7 }
 0x3a5   : > { %p1756_p12 = scmp.lt.s32.totalorder %s1754_s23, %s1750_s9 }
 0x3a6   : > { %p1752_p1 = pnand %p1751_p10, %p1982_p8 }
 0x3a7   : > { %p1757_p5 = por %p1756_p12, %p1755_p6 }
 0x3a8   : > { %p1753_p4 = pneg %p1752_p1 }
 0x3aa   : > { %p1758_p3 = pnand %p1757_p5, %p1753_p4 }
 0x3ac   : > { %1761 = shalt.err (!%p1758_p3)
}
 0x3ad   : > { %s1837_s17 = smov 1024   ;;  %s1838_s22 = smov 64  }
 0x3ae   : > { %1530 = dma.vmem_to_hbm [thread:$0]  (%p1982_p8), %s2082_s30, 2048, %s2080_s5, %s1217_s27, %s1837_s17, %s1837_s17, %s1838_s22  }
 0x3af PF: > { %s1248_s20 = sand.u32 1, %s1804_s24   ;;  %p2167_p2 = scmp.ne.s32.totalorder %s2154_s12, 0 }
 0x3b0   : > { %p2168_p11 = scmp.ge.s32.totalorder %s1824_s29, 2  ;;  %s1249_s8 = scalar_lea.sflag [#allocation5], %s1248_s20 }
 0x3b2   : > { %p1547_p7 = pnand %p2168_p11, %p2167_p2 }
 0x3b4   : > { %p1548_p9 = pneg %p1547_p7 }
 0x3b6   : > { %1799 = dma.done.wait (%p1548_p9), %s1249_s8, 2048  }
 0x3b7   : > { %1801 = vsyncadd (%p1548_p9), %s1249_s8, 4294965248  ;;  %s25_s29 = sadd.s32 1, %s1824_s29   ;;  %s2169_s24 = smov %s1808_s25 }
 0x3b8   : > { %p22_p13 = scmp.ge.s32.totalorder %s25_s29, 4   ;;  %s2170_s25 = smov %s1812_s26 }
 0x3b9   : > { %s2171_s26 = smov %s1994_s18  ;;  %s2172_s27 = smov %s1820_s28 }
 0x3ba   : > { %s2173_s28 = smov %s2175_s19  ;;  %24 = sbr.rel (!%p22_p13) target bundleno = 12 (0xc), region = 113 }
 0x3bf   :  { %1254 = vsyncpa [#allocation4], 1 }
 0x3c0   :  { %1256 = vsyncpa [#allocation4 + $0x1], 1 }
 0x3c1   :  { %1257 = vsyncpa [#allocation7], 1 }
 0x3c2   :  { %1258 = vsyncpa [#allocation10], 1 }
 0x3c3   :  { %1259 = vsyncpa [#allocation5], 1 }
 0x3c4   :  { %1261 = vsyncpa [#allocation5 + $0x1], 1 }

</bundles_post_ra>
